<compile_context>
chip_gen: v5e
topology: v5e:2x2
jax: 0.10.0
libtpu: 0.0.40
codegen_flags: <defaults>
</compile_context>

<pallas_src>
import jax
import jax.numpy as jnp
from jax.experimental import pallas as pl
from jax.experimental.pallas import tpu as pltpu


def _mask_mul_kernel(x_ref, m_ref, o_ref):
    # x_ref: (tile_r, tile_l); m_ref: (1, tile_l) -> sublane broadcast on VPU.
    o_ref[...] = x_ref[...] * m_ref[...]


def _round_down(x, m):
    return (x // m) * m


def elemwise_multiply(x, mask_1d, *, target_block_bytes=2 * 1024 * 1024):
    """x: (N, C, H, W); mask_1d: (C,). Returns x * mask_1d[None, :, None, None]."""
    n, c, h, w = x.shape
    assert mask_1d.shape == (c,)
    dtype = x.dtype
    itemsize = jnp.dtype(dtype).itemsize
    # dtype-aware sublane packing: f32 -> 8, bf16 -> 16, int8/fp8 -> 32.
    sublane = {4: 8, 2: 16, 1: 32}.get(itemsize, 8)

    # Lane-dense 2D view (free layout plumbing in the wrapper).
    rows, cols = n, c * h * w
    x2 = x.reshape(rows, cols)
    # (1, C*H*W) mask row == the PyTorch parameter's footprint; 1/N of the
    # activation traffic, and avoids the old N*C-tiled wrapper materialization.
    mask_row = jnp.broadcast_to(
        mask_1d.astype(dtype)[:, None], (c, h * w)).reshape(1, cols)

    # Row (sublane) tile: whole batch unless it is large and aligned.
    if rows > 512 and rows % sublane == 0:
        tile_r = 512
    else:
        tile_r = rows  # full extent is always legal under the (8,128) rule

    # Lane tile: multiple of 128, sized for ~target_block_bytes per block,
    # ragged last block handled by the cdiv grid (no divisor search).
    if cols % 128 != 0:
        tile_l = cols  # never hit by WRN shapes; correct but masked stores
        # TODO(synk): pad cols to a 128 multiple to regain unmasked stores here.
    else:
        tile_l = max(128, _round_down(target_block_bytes // (tile_r * itemsize), 128))
        tile_l = min(tile_l, cols)
        # Keep >= 2 grid steps so both v7x TensorCores get work.
        if tile_r >= rows and tile_l >= cols and cols % 256 == 0:
            tile_l = cols // 2

    grid = (pl.cdiv(rows, tile_r), pl.cdiv(cols, tile_l))

    cost = pl.CostEstimate(
        flops=rows * cols,
        transcendentals=0,
        bytes_accessed=(2 * rows * cols + cols) * itemsize,
    )

    out2 = pl.pallas_call(
        _mask_mul_kernel,
        out_shape=jax.ShapeDtypeStruct((rows, cols), dtype),
        grid_spec=pltpu.PrefetchScalarGridSpec(
            num_scalar_prefetch=0,
            grid=grid,
            in_specs=[
                pl.BlockSpec((tile_r, tile_l), lambda i, j: (i, j)),
                pl.BlockSpec((1, tile_l), lambda i, j: (0, j)),
            ],
            out_specs=pl.BlockSpec((tile_r, tile_l), lambda i, j: (i, j)),
        ),
        compiler_params=pltpu.CompilerParams(
            # Both grid axes independent -> shard across TensorCores (v7x).
            dimension_semantics=("parallel", "parallel"),
        ),
        cost_estimate=cost,
    )(x2, mask_row)

    return out2.reshape(n, c, h, w)


if __name__ == "__main__":
    key = jax.random.PRNGKey(0)
    kx, km, kx2, km2, kx3, km3 = jax.random.split(key, 6)

    # 1) Small shape consistent with the module's first mask layer (f32).
    N, C, H, W = 2, 4, 16, 16
    x = jax.random.normal(kx, (N, C, H, W), dtype=jnp.float32)
    mask_1d = jax.random.normal(km, (C,), dtype=jnp.float32)
    out = jax.block_until_ready(elemwise_multiply(x, mask_1d))
    ref = x * mask_1d[None, :, None, None]
    assert out.shape == (N, C, H, W)
    assert jnp.allclose(out, ref, atol=1e-6, rtol=1e-6), "f32 mismatch vs reference"

    # 2) Late WRN stage shape: 8x8 spatial (H*W = 64 < 128).  The lane-dense
    #    (N, C*H*W) layout keeps stores unmasked here.
    N2, C2, H2, W2 = 2, 8, 8, 8
    x2 = jax.random.normal(kx2, (N2, C2, H2, W2), dtype=jnp.float32)
    m2 = jax.random.normal(km2, (C2,), dtype=jnp.float32)
    out2 = jax.block_until_ready(elemwise_multiply(x2, m2))
    ref2 = x2 * m2[None, :, None, None]
    assert jnp.allclose(out2, ref2, atol=1e-6, rtol=1e-6), "small-spatial mismatch"

    # 3) bf16 path (dtype-aware sublane alignment).
    x3 = jax.random.normal(kx3, (N, C, H, W), dtype=jnp.bfloat16)
    m3 = jax.random.normal(km3, (C,), dtype=jnp.bfloat16)
    out3 = jax.block_until_ready(elemwise_multiply(x3, m3))
    ref3 = x3 * m3[None, :, None, None]
    assert jnp.allclose(out3.astype(jnp.float32), ref3.astype(jnp.float32),
                        atol=1e-2, rtol=1e-2), "bf16 mismatch vs reference"

    print("KERNEL_OK")
</pallas_src>

<mosaic_0001>
module attributes {stable_mosaic.version = 11 : i64} {
  func.func @_mask_mul_kernel(%arg0: i32, %arg1: i32, %arg2: memref<2x512xf32, #tpu.memory_space<vmem>>, %arg3: memref<1x512xf32, #tpu.memory_space<vmem>>, %arg4: memref<2x512xf32, #tpu.memory_space<vmem>>) attributes {dimension_semantics = [#tpu.dimension_semantics<parallel>, #tpu.dimension_semantics<parallel>], iteration_bounds = array<i64: 1, 2>, scalar_prefetch = 0 : i64, scratch_operands = 0 : i64, tpu.core_type = #tpu.core_type<tc>, window_params = [{transform_indices = @transform_0, window_bounds = array<i64: 2, 512>}, {transform_indices = @transform_1, window_bounds = array<i64: 1, 512>}, {transform_indices = @transform_2, window_bounds = array<i64: 2, 512>}]} {
    %c0 = arith.constant 0 : index
    %c0_0 = arith.constant 0 : index
    %0 = vector.load %arg2[%c0, %c0_0] : memref<2x512xf32, #tpu.memory_space<vmem>>, vector<2x512xf32>
    %c0_1 = arith.constant 0 : index
    %c0_2 = arith.constant 0 : index
    %1 = vector.load %arg3[%c0_1, %c0_2] : memref<1x512xf32, #tpu.memory_space<vmem>>, vector<1x512xf32>
    %2 = vector.broadcast %1 : vector<1x512xf32> to vector<2x512xf32>
    %3 = arith.mulf %0, %2 : vector<2x512xf32>
    %c0_3 = arith.constant 0 : index
    %c0_4 = arith.constant 0 : index
    %4 = vector.load %arg4[%c0_3, %c0_4] : memref<2x512xf32, #tpu.memory_space<vmem>>, vector<2x512xf32>
    tpu.vector_store %arg4[%c0_3, %c0_4], %3 {strides = array<i32>} : memref<2x512xf32, #tpu.memory_space<vmem>>, vector<2x512xf32>,
    return
  }
  func.func @transform_0(%arg0: i32, %arg1: i32) -> (i32, i32) {
    %c0_i32 = arith.constant 0 : i32
    return %arg0, %arg1 : i32, i32
  }
  func.func @transform_1(%arg0: i32, %arg1: i32) -> (i32, i32) {
    %c0_i32 = arith.constant 0 : i32
    %c0_i32_0 = arith.constant 0 : i32
    return %c0_i32, %arg1 : i32, i32
  }
  func.func @transform_2(%arg0: i32, %arg1: i32) -> (i32, i32) {
    %c0_i32 = arith.constant 0 : i32
    return %arg0, %arg1 : i32, i32
  }
}

</mosaic_0001>

<bundles_post_ra>
// kernel: tpu_custom_call.1
= control target key start
LH: loop header
LB: loop body
LE: loop exit
PB: predicated region body
PF: predicated region fallthrough
CT: control target
= control target key end

     0   :  { %7 = vsyncpa [#allocation3], 0  ;;  %s755_s0 = inlined_call_operand.hbm [shape: f32[2,1024], index: 0, kind: input, shape index: {}]   ;;  %s756_s1 = inlined_call_operand.hbm [shape: f32[1,1024], index: 1, kind: input, shape index: {}]   ;;  %s757_s2 = inlined_call_operand.hbm [shape: f32[2,1024], index: 2, kind: output, shape index: {}]  }
   0x1   :  { %9 = vsyncpa [#allocation3 + $0x1], 0 }
   0x2   :  { %10 = vsyncpa [#allocation6], 0 }
   0x3   :  { %12 = vsyncpa [#allocation6 + $0x1], 0 }
   0x4   :  { %13 = vsyncpa [#allocation4], 0 }
   0x5   :  { %15 = vsyncpa [#allocation4 + $0x1], 0  ;;  %s617_s9 = smov 0   ;;  %s619_s10 = smov 0  }
   0x6   :  { %s621_s11 = smov 0   ;;  %s623_s12 = smov 0  }
   0x7   :  { %s625_s13 = smov 0   ;;  %s627_s14 = smov 0  }
   0x8 LB: > { %s367_s15 = sadd.s32 4294967295, %s600_s14   ;;  %s368_s16 = sadd.s32 4294967294, %s600_s14   ;;  %s600_s14 = sphi %s627_s14, %s21_s14   ;;  %s596_s13 = sphi %s625_s13, %s767_s13   ;;  %s592_s12 = sphi %s623_s12, %s766_s12   ;;  %s588_s11 = sphi %s621_s11, %s765_s11   ;;  %s584_s10 = sphi %s619_s10, %s764_s10   ;;  %s580_s9 = sphi %s617_s9, %s763_s9  }
   0x9   : > { %s30_s17 = sadd.s32 1, %s596_s13  ;;  %s42_s18 = sadd.s32 1, %s588_s11 }
   0xa   : > { %p31_p0 = scmp.ge.s32.totalorder %s30_s17, 2  ;;  %p49_p1 = scmp.ne.s32.totalorder %s588_s11, %s584_s10 }
   0xb   : > { %p50_p2 = scmp.eq.s32.totalorder %s600_s14, 0  ;;  %p55_p3 = scmp.ne.s32.totalorder %s584_s10, %s580_s9 }
   0xc   : > { %s769_s17 = smov (%p31_p0, %s30_s17), 0  ;;  %p56_p5 = scmp.eq.s32.totalorder %s367_s15, 0 }
   0xd   : > { %p658_p4 = por %p50_p2, %p49_p1  ;;  %s38_s20 = ssub.s32 %s596_s13, %s769_s17 }
   0xe   : > { %p107_p6 = scmp.eq.s32.totalorder %s367_s15, 1  ;;  %p40_p7 = scmp.eq.s32.totalorder %s38_s20, 0 }
   0xf   : > { %p664_p8 = por %p56_p5, %p55_p3  ;;  %p113_p10 = scmp.eq.s32.totalorder %s368_s16, 1 }
  0x10   : > { %p668_p9 = por %p107_p6, %p49_p1  ;;  %p370_p12 = scmp.ge.s32.totalorder %s600_s14, 2 }
  0x11   : > { %s673_s23 = scalar_select %p40_p7, %s588_s11, %s42_s18  }
  0x12   : > { %p675_p11 = por %p113_p10, %p55_p3  ;;  %p404_p13 = scmp.lt.s32.totalorder %s600_s14, 2 }
  0x13   : > { %s133_s25 = sand.u32 1, %s588_s11   ;;  %s385_s27 = sshll.u32 %s596_s13, 3 }
  0x14   : > { %s371_s26 = sshll.u32 %s133_s25, 3  ;;  %s144_s30 = scalar_lea.hbm %s755_s0, %s385_s27 }
  0x15   : > { %s137_s3 = scalar_lea.vmem [#allocation2], %s371_s26  ;;  %s146_s5 = sshll.u32 %s144_s30, 4  ;;  %s147_s5 = int_to_ptr.hbm [resolvable:$true] %s146_s5 }
  0x16   : > { %s148_s4 = sshll.u32 %s137_s3, 4  ;;  %p688_p0 = pnand %p404_p13, %p658_p4  ;;  %s149_s4 = int_to_ptr.vmem [resolvable:$true] %s148_s4 }
  0x17   : > { %p376_p1 = scmp.ge.s32.totalorder %s600_s14, 1  ;;  %p172_p2 = scmp.lt.s32.totalorder %s600_s14, 3 }
  0x18   : > { %s134_s7 = scalar_lea.sflag [#allocation3], %s133_s25  ;;  %s374_s8 = sshll.u32 %s133_s25, 2 }
  0x19   : > { %396 = dma.hbm_to_vmem [thread:$0]  (!%p688_p0), %s147_s5, 128, %s149_s4, %s134_s7  }
  0x1a   : > { %p173_p3 = pnand %p376_p1, %p172_p2  ;;  %s375_s15 = sshll.u32 %s596_s13, 2 }
  0x1b   : > { %s163_s20 = scalar_lea.hbm %s756_s1, %s375_s15  ;;  %s159_s26 = scalar_lea.vmem [#allocation5], %s374_s8 }
  0x1c   : > { %s167_s19 = sshll.u32 %s159_s26, 4  ;;  %s165_s27 = sshll.u32 %s163_s20, 4  ;;  %s168_s19 = int_to_ptr.vmem [resolvable:$true] %s167_s19  ;;  %s166_s27 = int_to_ptr.hbm [resolvable:$true] %s165_s27 }
  0x1d   : > { %s156_s28 = scalar_lea.sflag [#allocation6], %s133_s25  ;;  %176 = sbr.rel (%p173_p3) target bundleno = 53 (0x35), region = 28 }
  0x1e   : > { %399 = dma.hbm_to_vmem [thread:$0]  (!%p688_p0), %s166_s27, 64, %s168_s19, %s156_s28  }
  0x1f   : > { %s703_s29 = sand.u32 (!%p173_p3), 1, %s584_s10  }
  0x20   : > { %s377_s30 = sshll.u32 (!%p173_p3), %s703_s29, 3  ;;  %s179_s3 = scalar_lea.sflag (!%p173_p3), [#allocation3], %s703_s29 }
  0x21   : > { %s182_s4 = scalar_lea.vmem (!%p173_p3), [#allocation2], %s377_s30 }
  0x22   : > { %567 = dma.done.wait (%p664_p8), %s179_s3, 128  }
  0x23   : > { %569 = vsyncadd (%p664_p8), %s179_s3, 4294967168  ;;  %s378_s25 = sshll.u32 %s703_s29, 2  ;;  %s189_s5 = scalar_lea.sflag [#allocation6], %s703_s29 }
  0x24   : > { %s192_s6 = scalar_lea.vmem [#allocation5], %s378_s25 }
  0x25   : > { %571 = dma.done.wait (%p664_p8), %s189_s5, 64  }
  0x26   : > { %573 = vsyncadd (%p664_p8), %s189_s5, 4294967232  ;;  %s386_s7 = sshll.u32 %s592_s12, 3  ;;  %v223_v0 = vld [vmem:[%s192_s6] sm:$0xf]  ;;  %vm232_vm0 = vcmask 1041408   ;;  %vm234_vm1 = vcmask 1045508  }
  0x27   : > { %v225_v1 = vperm.slane %v223_v0, 0  ;;  %v226_v2 = vperm.slane %v223_v0, 1  ;;  %v227_v3 = vperm.slane %v223_v0, 2  ;;  %v228_v4 = vperm.slane %v223_v0, 3  ;;  %s255_s16 = scalar_lea.hbm %s757_s2, %s386_s7  ;;  %v222_v8 = vld [vmem:[%s182_s4] sm:$0xff]  ;;  %s218_s21 = scalar_lea.vmem [#allocation7], %s377_s30 }
  0x28   : > { %vm236_vm2 = vcmask 1043456   ;;  %s257_s12 = sshll.u32 %s218_s21, 4  ;;  %s259_s18 = sshll.u32 %s255_s16, 4  ;;  %s258_s12 = int_to_ptr.vmem [resolvable:$true] %s257_s12  ;;  %s260_s18 = int_to_ptr.hbm [resolvable:$true] %s259_s18 }
  0x29   : > { %v229_v5 = vrot.slane %v226_v2, 6  ;;  %v230_v6 = vrot.slane %v227_v3, 4  ;;  %v231_v7 = vrot.slane %v228_v4, 2  ;;  %s242_s20 = scalar_lea.sflag [#allocation4], %s703_s29  ;;  %s528_s26 = sshra.s32 %s260_s18, 4  ;;  %s529_s26 = int_to_ptr.hbm [resolvable:$true] %s528_s26 }
  0x2a   : > { %s530_s19 = scalar_lea.hbm %s529_s26, 8  ;;  %s534_s30 = scalar_lea.hbm %s757_s2, 16 }
  0x2b   : > { %v233_v9 = vsel %vm232_vm0, %v225_v1, %v229_v5  ;;  %v235_v10 = vsel %vm234_vm1, %v230_v6, %v231_v7  ;;  %p531_p4 = scmp.ne.s32.totalorder %s529_s26, %s530_s19  ;;  %p535_p7 = scmp.lt.s32.totalorder %s529_s26, %s757_s2 }
  0x2c   : > { %v237_v11 = vsel %vm236_vm2, %v233_v9, %v235_v10  ;;  %p536_p8 = scmp.lt.s32.totalorder %s534_s30, %s530_s19 }
  0x2d   : > { %v239_v12 = vmul.f32 %v237_v11, %v222_v8  ;;  %p532_p5 = pnand %p531_p4, %p668_p9 }
  0x2e   : > { %p537_p10 = por %p536_p8, %p535_p7 }
  0x2f   : > { %240 = vst [vmem:[%s218_s21] sm:$0xff] %v239_v12  ;;  %p533_p6 = pneg %p532_p5 }
  0x31   : > { %p538_p13 = pnand %p537_p10, %p533_p6 }
  0x33   : > { %541 = shalt.err (!%p538_p13)
}
  0x34   : > { %391 = dma.vmem_to_hbm [thread:$0]  (%p668_p9), %s258_s12, 128, %s260_s18, %s242_s20  }
  0x35 PF: > { %s271_s29 = sand.u32 1, %s580_s9   ;;  %p401_p0 = pnand %p370_p12, %p675_p11 }
  0x36   : > { %s272_s25 = scalar_lea.sflag [#allocation4], %s271_s29 }
  0x37   : > { %p402_p1 = pneg %p401_p0 }
  0x39   : > { %575 = dma.done.wait (%p402_p1), %s272_s25, 128  }
  0x3a   : > { %577 = vsyncadd (%p402_p1), %s272_s25, 4294967168  ;;  %s21_s14 = sadd.s32 1, %s600_s14   ;;  %s763_s9 = smov %s584_s10 }
  0x3b   : > { %p18_p2 = scmp.ge.s32.totalorder %s21_s14, 4   ;;  %s764_s10 = smov %s588_s11 }
  0x3c   : > { %s765_s11 = smov %s673_s23  ;;  %s766_s12 = smov %s596_s13 }
  0x3d   : > { %s767_s13 = smov %s769_s17  ;;  %20 = sbr.rel (!%p18_p2) target bundleno = 8 (0x8), region = 86 }
  0x42   :  { %278 = vsyncpa [#allocation3], 1 }
  0x43   :  { %280 = vsyncpa [#allocation3 + $0x1], 1 }
  0x44   :  { %281 = vsyncpa [#allocation6], 1 }
  0x45   :  { %283 = vsyncpa [#allocation6 + $0x1], 1 }
  0x46   :  { %284 = vsyncpa [#allocation4], 1 }
  0x47   :  { %286 = vsyncpa [#allocation4 + $0x1], 1 }

</bundles_post_ra>
